<compile_context>
chip_gen: v5e
topology: v5e:2x2
jax: 0.10.0
libtpu: 0.0.40
codegen_flags: <defaults>
</compile_context>

<pallas_src>
import jax
import jax.numpy as jnp
from jax.experimental import pallas as pl
from jax.experimental.pallas import tpu as pltpu


def _fused_encoder_kernel(
    xp_ref, wp1_ref, bp1_ref, wp2_ref, bp2_ref,      # piece branch
    xc_ref, wc1_ref, bc1_ref, wc2_ref, bc2_ref,      # critical-square branch
    op_ref, oc_ref,                                  # outputs (transposed)
):
    """Both 2-layer MLPs on one node tile, transposed (lane = node axis)."""
    # --- piece encoder: [H, Dp] @ [Dp, T] -> [H, T]
    hp = jnp.dot(wp1_ref[...], xp_ref[...],
                 preferred_element_type=jnp.float32) + bp1_ref[...]
    hp = jnp.maximum(hp, 0.0)
    yp = jnp.dot(wp2_ref[...], hp,
                 preferred_element_type=jnp.float32) + bp2_ref[...]
    op_ref[...] = yp.astype(op_ref.dtype)

    # --- critical-square encoder: [H, Dc] @ [Dc, T] -> [H, T]
    hc = jnp.dot(wc1_ref[...], xc_ref[...],
                 preferred_element_type=jnp.float32) + bc1_ref[...]
    hc = jnp.maximum(hc, 0.0)
    yc = jnp.dot(wc2_ref[...], hc,
                 preferred_element_type=jnp.float32) + bc2_ref[...]
    oc_ref[...] = yc.astype(oc_ref.dtype)


def _round_up(x, m):
    return ((x + m - 1) // m) * m


def _pad_cols(xt, n_pad):
    n = xt.shape[1]
    if n == n_pad:
        return xt
    return jnp.pad(xt, ((0, 0), (0, n_pad - n)))


def pag_node_encoder(x_dict, params, *, tile_n=512):
    """Forward pass equivalent to PAGNodeEncoder.forward (single pallas_call)."""
    xp = x_dict["piece"]             # [Np, 11]
    xc = x_dict["critical_square"]   # [Nc, 4]
    n_p, d_p = xp.shape
    n_c, d_c = xc.shape
    wp1, bp1, wp2, bp2 = params["piece"]
    wc1, bc1, wc2, bc2 = params["critical_square"]
    h = wp1.shape[1]

    # Common padded node count; node tile is a multiple of 128 (lane-dense).
    n_max = max(n_p, n_c)
    tile = min(tile_n, _round_up(n_max, 128))
    n_pad = _round_up(n_max, tile)
    grid = (pl.cdiv(n_pad, tile),)

    # Transposed, zero-padded inputs: node axis last (lane dim).
    xp_t = _pad_cols(xp.T, n_pad)    # [11, n_pad]
    xc_t = _pad_cols(xc.T, n_pad)    # [4,  n_pad]

    # Grid-invariant (VMEM-resident) params; node-tiled activations/outputs.
    full_spec = lambda shape: pl.BlockSpec(shape, lambda i: (0, 0))
    col_spec = lambda rows: pl.BlockSpec((rows, tile), lambda i: (0, i))

    out_p, out_c = pl.pallas_call(
        _fused_encoder_kernel,
        out_shape=(
            jax.ShapeDtypeStruct((h, n_pad), xp.dtype),
            jax.ShapeDtypeStruct((h, n_pad), xc.dtype),
        ),
        grid=grid,
        in_specs=[
            col_spec(d_p),            # x_piece^T tile
            full_spec((h, d_p)),      # W1_piece^T
            full_spec((h, 1)),        # b1_piece
            full_spec((h, h)),        # W2_piece^T
            full_spec((h, 1)),        # b2_piece
            col_spec(d_c),            # x_cs^T tile
            full_spec((h, d_c)),      # W1_cs^T
            full_spec((h, 1)),        # b1_cs
            full_spec((h, h)),        # W2_cs^T
            full_spec((h, 1)),        # b2_cs
        ],
        out_specs=(
            col_spec(h),              # piece_emb^T tile
            col_spec(h),              # critical_square_emb^T tile
        ),
        compiler_params=pltpu.CompilerParams(
            dimension_semantics=("parallel",)),
    )(
        xp_t, wp1.T, bp1.reshape(h, 1), wp2.T, bp2.reshape(h, 1),
        xc_t, wc1.T, bc1.reshape(h, 1), wc2.T, bc2.reshape(h, 1),
    )

    # Un-pad and transpose back to the PyTorch [num_nodes, H] layout.
    piece_emb = out_p[:, :n_p].T
    critical_square_emb = out_c[:, :n_c].T
    return piece_emb, critical_square_emb


def init_encoder_params(key, in_dim, hidden_dim, dtype=jnp.float32):
    """Synthetic params for Linear(in,H) -> ReLU -> Linear(H,H); W is [in, out]."""
    k1, k2, k3, k4 = jax.random.split(key, 4)
    s1 = 1.0 / jnp.sqrt(jnp.asarray(in_dim, dtype))
    s2 = 1.0 / jnp.sqrt(jnp.asarray(hidden_dim, dtype))
    w1 = jax.random.uniform(k1, (in_dim, hidden_dim), dtype, -s1, s1)
    b1 = jax.random.uniform(k2, (hidden_dim,), dtype, -s1, s1)
    w2 = jax.random.uniform(k3, (hidden_dim, hidden_dim), dtype, -s2, s2)
    b2 = jax.random.uniform(k4, (hidden_dim,), dtype, -s2, s2)
    return w1, b1, w2, b2


def _ref_mlp2(x, w1, b1, w2, b2):
    h = jnp.maximum(x @ w1 + b1, 0.0)
    return h @ w2 + b2


if __name__ == "__main__":
    hidden_dim = 64      # PyTorch default
    n_pieces = 32        # small: a couple of boards' worth of piece nodes
    n_critical = 16

    key = jax.random.PRNGKey(0)
    k_piece, k_cs, k_px, k_cx = jax.random.split(key, 4)

    params = {
        "piece": init_encoder_params(k_piece, 11, hidden_dim),
        "critical_square": init_encoder_params(k_cs, 4, hidden_dim),
    }

    x_dict = {
        "piece": jax.random.normal(k_px, (n_pieces, 11), jnp.float32),
        "critical_square": jax.random.normal(k_cx, (n_critical, 4), jnp.float32),
    }

    piece_emb, cs_emb = pag_node_encoder(x_dict, params)
    jax.block_until_ready((piece_emb, cs_emb))

    # Correctness check against a plain-JAX reference.
    piece_ref = _ref_mlp2(x_dict["piece"], *params["piece"])
    cs_ref = _ref_mlp2(x_dict["critical_square"], *params["critical_square"])
    assert piece_emb.shape == (n_pieces, hidden_dim)
    assert cs_emb.shape == (n_critical, hidden_dim)
    assert jnp.allclose(piece_emb, piece_ref, atol=1e-5, rtol=1e-5)
    assert jnp.allclose(cs_emb, cs_ref, atol=1e-5, rtol=1e-5)

    print("KERNEL_OK")
</pallas_src>

<mosaic_0001>
module attributes {stable_mosaic.version = 11 : i64} {
  func.func @_fused_encoder_kernel(%arg0: i32, %arg1: memref<11x128xf32, #tpu.memory_space<vmem>>, %arg2: memref<64x11xf32, #tpu.memory_space<vmem>>, %arg3: memref<64x1xf32, #tpu.memory_space<vmem>>, %arg4: memref<64x64xf32, #tpu.memory_space<vmem>>, %arg5: memref<64x1xf32, #tpu.memory_space<vmem>>, %arg6: memref<4x128xf32, #tpu.memory_space<vmem>>, %arg7: memref<64x4xf32, #tpu.memory_space<vmem>>, %arg8: memref<64x1xf32, #tpu.memory_space<vmem>>, %arg9: memref<64x64xf32, #tpu.memory_space<vmem>>, %arg10: memref<64x1xf32, #tpu.memory_space<vmem>>, %arg11: memref<64x128xf32, #tpu.memory_space<vmem>>, %arg12: memref<64x128xf32, #tpu.memory_space<vmem>>) attributes {dimension_semantics = [#tpu.dimension_semantics<parallel>], iteration_bounds = array<i64: 1>, scalar_prefetch = 0 : i64, scratch_operands = 0 : i64, tpu.core_type = #tpu.core_type<tc>, window_params = [{transform_indices = @transform_0, window_bounds = array<i64: 11, 128>}, {pipeline_mode = #tpu.pipeline_mode<synchronous>, transform_indices = @transform_1, window_bounds = array<i64: 64, 11>}, {pipeline_mode = #tpu.pipeline_mode<synchronous>, transform_indices = @transform_2, window_bounds = array<i64: 64, 1>}, {pipeline_mode = #tpu.pipeline_mode<synchronous>, transform_indices = @transform_3, window_bounds = array<i64: 64, 64>}, {pipeline_mode = #tpu.pipeline_mode<synchronous>, transform_indices = @transform_4, window_bounds = array<i64: 64, 1>}, {transform_indices = @transform_5, window_bounds = array<i64: 4, 128>}, {pipeline_mode = #tpu.pipeline_mode<synchronous>, transform_indices = @transform_6, window_bounds = array<i64: 64, 4>}, {pipeline_mode = #tpu.pipeline_mode<synchronous>, transform_indices = @transform_7, window_bounds = array<i64: 64, 1>}, {pipeline_mode = #tpu.pipeline_mode<synchronous>, transform_indices = @transform_8, window_bounds = array<i64: 64, 64>}, {pipeline_mode = #tpu.pipeline_mode<synchronous>, transform_indices = @transform_9, window_bounds = array<i64: 64, 1>}, {transform_indices = @transform_10, window_bounds = array<i64: 64, 128>}, {transform_indices = @transform_11, window_bounds = array<i64: 64, 128>}]} {
    %c0 = arith.constant 0 : index
    %c0_0 = arith.constant 0 : index
    %0 = vector.load %arg2[%c0, %c0_0] : memref<64x11xf32, #tpu.memory_space<vmem>>, vector<64x11xf32>
    %c0_1 = arith.constant 0 : index
    %c0_2 = arith.constant 0 : index
    %1 = vector.load %arg1[%c0_1, %c0_2] : memref<11x128xf32, #tpu.memory_space<vmem>>, vector<11x128xf32>
    %cst = arith.constant dense<0.000000e+00> : vector<64x128xf32>
    %2 = tpu.matmul %0, %1, %cst {dimension_numbers = #tpu.dot_dimension_numbers<[1], [0], [0], [1], [0, 0, 1, 1], [], []>} : vector<64x11xf32>, vector<11x128xf32>, vector<64x128xf32> -> vector<64x128xf32>
    %c0_3 = arith.constant 0 : index
    %c0_4 = arith.constant 0 : index
    %3 = vector.load %arg3[%c0_3, %c0_4] : memref<64x1xf32, #tpu.memory_space<vmem>>, vector<64x1xf32>
    %4 = vector.broadcast %3 : vector<64x1xf32> to vector<64x128xf32>
    %5 = arith.addf %2, %4 : vector<64x128xf32>
    %cst_5 = arith.constant 0.000000e+00 : f32
    %6 = vector.broadcast %cst_5 : f32 to vector<64x128xf32>
    %7 = arith.maximumf %5, %6 : vector<64x128xf32>
    %c0_6 = arith.constant 0 : index
    %c0_7 = arith.constant 0 : index
    %8 = vector.load %arg4[%c0_6, %c0_7] : memref<64x64xf32, #tpu.memory_space<vmem>>, vector<64x64xf32>
    %cst_8 = arith.constant dense<0.000000e+00> : vector<64x128xf32>
    %9 = tpu.matmul %8, %7, %cst_8 {dimension_numbers = #tpu.dot_dimension_numbers<[1], [0], [0], [1], [0, 0, 1, 1], [], []>} : vector<64x64xf32>, vector<64x128xf32>, vector<64x128xf32> -> vector<64x128xf32>
    %c0_9 = arith.constant 0 : index
    %c0_10 = arith.constant 0 : index
    %10 = vector.load %arg5[%c0_9, %c0_10] : memref<64x1xf32, #tpu.memory_space<vmem>>, vector<64x1xf32>
    %11 = vector.broadcast %10 : vector<64x1xf32> to vector<64x128xf32>
    %12 = arith.addf %9, %11 : vector<64x128xf32>
    %c0_11 = arith.constant 0 : index
    %c0_12 = arith.constant 0 : index
    %13 = vector.load %arg11[%c0_11, %c0_12] : memref<64x128xf32, #tpu.memory_space<vmem>>, vector<64x128xf32>
    tpu.vector_store %arg11[%c0_11, %c0_12], %12 {strides = array<i32>} : memref<64x128xf32, #tpu.memory_space<vmem>>, vector<64x128xf32>,
    %c0_13 = arith.constant 0 : index
    %c0_14 = arith.constant 0 : index
    %14 = vector.load %arg7[%c0_13, %c0_14] : memref<64x4xf32, #tpu.memory_space<vmem>>, vector<64x4xf32>
    %c0_15 = arith.constant 0 : index
    %c0_16 = arith.constant 0 : index
    %15 = vector.load %arg6[%c0_15, %c0_16] : memref<4x128xf32, #tpu.memory_space<vmem>>, vector<4x128xf32>
    %cst_17 = arith.constant dense<0.000000e+00> : vector<64x128xf32>
    %16 = tpu.matmul %14, %15, %cst_17 {dimension_numbers = #tpu.dot_dimension_numbers<[1], [0], [0], [1], [0, 0, 1, 1], [], []>} : vector<64x4xf32>, vector<4x128xf32>, vector<64x128xf32> -> vector<64x128xf32>
    %c0_18 = arith.constant 0 : index
    %c0_19 = arith.constant 0 : index
    %17 = vector.load %arg8[%c0_18, %c0_19] : memref<64x1xf32, #tpu.memory_space<vmem>>, vector<64x1xf32>
    %18 = vector.broadcast %17 : vector<64x1xf32> to vector<64x128xf32>
    %19 = arith.addf %16, %18 : vector<64x128xf32>
    %cst_20 = arith.constant 0.000000e+00 : f32
    %20 = vector.broadcast %cst_20 : f32 to vector<64x128xf32>
    %21 = arith.maximumf %19, %20 : vector<64x128xf32>
    %c0_21 = arith.constant 0 : index
    %c0_22 = arith.constant 0 : index
    %22 = vector.load %arg9[%c0_21, %c0_22] : memref<64x64xf32, #tpu.memory_space<vmem>>, vector<64x64xf32>
    %cst_23 = arith.constant dense<0.000000e+00> : vector<64x128xf32>
    %23 = tpu.matmul %22, %21, %cst_23 {dimension_numbers = #tpu.dot_dimension_numbers<[1], [0], [0], [1], [0, 0, 1, 1], [], []>} : vector<64x64xf32>, vector<64x128xf32>, vector<64x128xf32> -> vector<64x128xf32>
    %c0_24 = arith.constant 0 : index
    %c0_25 = arith.constant 0 : index
    %24 = vector.load %arg10[%c0_24, %c0_25] : memref<64x1xf32, #tpu.memory_space<vmem>>, vector<64x1xf32>
    %25 = vector.broadcast %24 : vector<64x1xf32> to vector<64x128xf32>
    %26 = arith.addf %23, %25 : vector<64x128xf32>
    %c0_26 = arith.constant 0 : index
    %c0_27 = arith.constant 0 : index
    %27 = vector.load %arg12[%c0_26, %c0_27] : memref<64x128xf32, #tpu.memory_space<vmem>>, vector<64x128xf32>
    tpu.vector_store %arg12[%c0_26, %c0_27], %26 {strides = array<i32>} : memref<64x128xf32, #tpu.memory_space<vmem>>, vector<64x128xf32>,
    return
  }
  func.func @transform_0(%arg0: i32) -> (i32, i32) {
    %c0_i32 = arith.constant 0 : i32
    %c0_i32_0 = arith.constant 0 : i32
    return %c0_i32, %arg0 : i32, i32
  }
  func.func @transform_1(%arg0: i32) -> (i32, i32) {
    %c0_i32 = arith.constant 0 : i32
    %c0_i32_0 = arith.constant 0 : i32
    %c0_i32_1 = arith.constant 0 : i32
    return %c0_i32, %c0_i32_0 : i32, i32
  }
  func.func @transform_2(%arg0: i32) -> (i32, i32) {
    %c0_i32 = arith.constant 0 : i32
    %c0_i32_0 = arith.constant 0 : i32
    %c0_i32_1 = arith.constant 0 : i32
    return %c0_i32, %c0_i32_0 : i32, i32
  }
  func.func @transform_3(%arg0: i32) -> (i32, i32) {
    %c0_i32 = arith.constant 0 : i32
    %c0_i32_0 = arith.constant 0 : i32
    %c0_i32_1 = arith.constant 0 : i32
    return %c0_i32, %c0_i32_0 : i32, i32
  }
  func.func @transform_4(%arg0: i32) -> (i32, i32) {
    %c0_i32 = arith.constant 0 : i32
    %c0_i32_0 = arith.constant 0 : i32
    %c0_i32_1 = arith.constant 0 : i32
    return %c0_i32, %c0_i32_0 : i32, i32
  }
  func.func @transform_5(%arg0: i32) -> (i32, i32) {
    %c0_i32 = arith.constant 0 : i32
    %c0_i32_0 = arith.constant 0 : i32
    return %c0_i32, %arg0 : i32, i32
  }
  func.func @transform_6(%arg0: i32) -> (i32, i32) {
    %c0_i32 = arith.constant 0 : i32
    %c0_i32_0 = arith.constant 0 : i32
    %c0_i32_1 = arith.constant 0 : i32
    return %c0_i32, %c0_i32_0 : i32, i32
  }
  func.func @transform_7(%arg0: i32) -> (i32, i32) {
    %c0_i32 = arith.constant 0 : i32
    %c0_i32_0 = arith.constant 0 : i32
    %c0_i32_1 = arith.constant 0 : i32
    return %c0_i32, %c0_i32_0 : i32, i32
  }
  func.func @transform_8(%arg0: i32) -> (i32, i32) {
    %c0_i32 = arith.constant 0 : i32
    %c0_i32_0 = arith.constant 0 : i32
    %c0_i32_1 = arith.constant 0 : i32
    return %c0_i32, %c0_i32_0 : i32, i32
  }
  func.func @transform_9(%arg0: i32) -> (i32, i32) {
    %c0_i32 = arith.constant 0 : i32
    %c0_i32_0 = arith.constant 0 : i32
    %c0_i32_1 = arith.constant 0 : i32
    return %c0_i32, %c0_i32_0 : i32, i32
  }
  func.func @transform_10(%arg0: i32) -> (i32, i32) {
    %c0_i32 = arith.constant 0 : i32
    %c0_i32_0 = arith.constant 0 : i32
    return %c0_i32, %arg0 : i32, i32
  }
  func.func @transform_11(%arg0: i32) -> (i32, i32) {
    %c0_i32 = arith.constant 0 : i32
    %c0_i32_0 = arith.constant 0 : i32
    return %c0_i32, %arg0 : i32, i32
  }
}

</mosaic_0001>

<bundles_post_ra>
// kernel: tpu_custom_call.1
= control target key start
LH: loop header
LB: loop body
LE: loop exit
PB: predicated region body
PF: predicated region fallthrough
CT: control target
= control target key end

     0   :  { %17 = vsyncpa [#allocation3], 0  ;;  %vm387_vm0 = vcmask 1043456   ;;  %v699_v2 = vmov 0   ;;  %vm122_vm1 = vcmask 1042432   ;;  %vm362_vm2 = vcmask 31744   ;;  %s1006_s0 = inlined_call_operand.vmem [shape: f32[11,128], index: 0, kind: input, shape index: {}]   ;;  %s1007_s1 = inlined_call_operand.vmem [shape: f32[64,11], index: 1, kind: input, shape index: {}]   ;;  %s1008_s2 = inlined_call_operand.vmem [shape: f32[64,1], index: 2, kind: input, shape index: {}]   ;;  %s1009_s3 = inlined_call_operand.vmem [shape: f32[64,64], index: 3, kind: input, shape index: {}]   ;;  %s1010_s4 = inlined_call_operand.vmem [shape: f32[64,1], index: 4, kind: input, shape index: {}]   ;;  %s1011_s5 = inlined_call_operand.vmem [shape: f32[4,128], index: 5, kind: input, shape index: {}]   ;;  %s1012_s6 = inlined_call_operand.vmem [shape: f32[64,4], index: 6, kind: input, shape index: {}]   ;;  %s1013_s7 = inlined_call_operand.vmem [shape: f32[64,1], index: 7, kind: input, shape index: {}]   ;;  %s1014_s8 = inlined_call_operand.vmem [shape: f32[64,64], index: 8, kind: input, shape index: {}]   ;;  %s1015_s9 = inlined_call_operand.vmem [shape: f32[64,1], index: 9, kind: input, shape index: {}]   ;;  %s1016_s10 = inlined_call_operand.hbm [shape: f32[64,128], index: 10, kind: output, shape index: {0}]   ;;  %s1017_s11 = inlined_call_operand.hbm [shape: f32[64,128], index: 11, kind: output, shape index: {1}]  }
   0x1   :  { %v313_v0 = vld [vmem:[%s1011_s5] sm:$0xf]  ;;  %v48_v1 = vld [vmem:[%s1006_s0 + $0x8] sm:$0x7]  ;;  %645 = vset.pattern.permute.xlu1 %v699_v2  ;;  %v321_v5 = vld [vmem:[%s1013_s7 + $0x38] sm:$0xff]  ;;  %644 = vset.pattern.permute.xlu0 %v699_v2  ;;  %vm97_vm3 = vcmask 89088  }
   0x2   :  { %622 = vmatpush.msk.msra.mxu2 %vm387_vm0, %v313_v0  ;;  %v305_v3 = vld [vmem:[%s1012_s6] sm:$0xff]  ;;  %v319_v4 = vld [vmem:[%s1013_s7 + $0x28] sm:$0xff]  ;;  %605 = vmatpush.msk.msra.mxu0 %vm122_vm1, %v48_v1  ;;  %v56_v10 = vld [vmem:[%s1008_s2 + $0x38] sm:$0xff] }
   0x3   :  { %v47_v6 = vld [vmem:[%s1006_s0] sm:$0xff]  ;;  %623 = vmatmul.msk.f32.vlgmr.msra.gmra.mxu2 %vm362_vm2, %v305_v3  ;;  %349 = vperm.xlu1 %645, %v319_v4   ;;  %v306_v9 = vld [vmem:[%s1012_s6 + $0x8] sm:$0xff]  ;;  %v320_v11 = vld [vmem:[%s1013_s7 + $0x30] sm:$0xff] }
   0x4   :  { %v39_v7 = vld [vmem:[%s1007_s1] sm:$0xff]  ;;  %359 = vperm.xlu0 %644, %v321_v5   ;;  %141 = vmatpush.msra.mxu0 %v47_v6 }
   0x5   :  { %v318_v8 = vld [vmem:[%s1013_s7 + $0x20] sm:$0xff]  ;;  %606 = vmatmul.msk.f32.vlgmr.msra.gmra.mxu0 %vm97_vm3, %v39_v7  ;;  %646 = vset.pattern.permute.xlu2 %v699_v2 }
   0x6   :  { %344 = vperm.xlu2 %646, %v318_v8  }
   0x7   :  { %18 = vsyncpa [#allocation5], 0  ;;  %v40_v12 = vld [vmem:[%s1007_s1 + $0x8] sm:$0xff]  ;;  %v55_v13 = vld [vmem:[%s1008_s2 + $0x30] sm:$0xff]  ;;  %vm231_vm4 = vcmask 523264   ;;  %s575_s13 = sshll.u32 %s1016_s10, 4  ;;  %s576_s13 = int_to_ptr.hbm [resolvable:$true] %s575_s13 }
   0x8   :  { %v307_v14 = vld [vmem:[%s1012_s6 + $0x10] sm:$0xff]  ;;  %v54_v15 = vld [vmem:[%s1008_s2 + $0x28] sm:$0xff]  ;;  %v317_v16 = vld [vmem:[%s1013_s7 + $0x18] sm:$0xff]  ;;  %s701_s0 = smov 128   ;;  %s702_s14 = smov 8  }
   0x9   :  { %v41_v17 = vld [vmem:[%s1007_s1 + $0x10] sm:$0xff]  ;;  %v308_v19 = vld [vmem:[%s1012_s6 + $0x18] sm:$0xff]  ;;  %v315_v20 = vld [vmem:[%s1013_s7 + $0x8] sm:$0xff]  ;;  %s703_s15 = smov [#allocation4]   ;;  %s588_s18 = sshll.u32 %s1017_s11, 4  ;;  %s589_s18 = int_to_ptr.hbm [resolvable:$true] %s588_s18 }
   0xa   :  { %v316_v18 = vld [vmem:[%s1013_s7 + $0x10] sm:$0xff]  ;;  %v53_v21 = vld [vmem:[%s1008_s2 + $0x20] sm:$0xff]  ;;  %v42_v22 = vld [vmem:[%s1007_s1 + $0x18] sm:$0xff] }
   0xb   :  { %624 = vmatmul.msk.f32.gmra.mxu2 %vm362_vm2, %v306_v9  ;;  %94 = vperm.xlu1 %645, %v56_v10   ;;  %v52_v23 = vld [vmem:[%s1008_s2 + $0x18] sm:$0xff]  ;;  %v309_v24 = vld [vmem:[%s1012_s6 + $0x20] sm:$0xff]  ;;  %v51_v25 = vld [vmem:[%s1008_s2 + $0x10] sm:$0xff] }
   0xc   :  { %354 = vperm.xlu0 %644, %v320_v11   ;;  %v314_v26 = vld [vmem:[%s1013_s7] sm:$0xff]  ;;  %v50_v28 = vld [vmem:[%s1008_s2 + $0x8] sm:$0xff]  ;;  %v311_v34 = vld [vmem:[%s1012_s6 + $0x30] sm:$0xff] }
   0xd   :  { %607 = vmatmul.msk.f32.gmra.mxu0 %vm97_vm3, %v40_v12  ;;  %v43_v27 = vld [vmem:[%s1007_s1 + $0x20] sm:$0xff]  ;;  %v310_v29 = vld [vmem:[%s1012_s6 + $0x28] sm:$0xff]  ;;  %v186_v35 = vld [vmem:[%s1010_s4 + $0x18] sm:$0xff] }
   0xe   :  { %89 = vperm.xlu2 %646, %v55_v13   ;;  %v183_v30 = vld [vmem:[%s1010_s4] sm:$0xff]  ;;  %v44_v32 = vld [vmem:[%s1007_s1 + $0x28] sm:$0xff]  ;;  %v185_v36 = vld [vmem:[%s1010_s4 + $0x10] sm:$0xff] }
   0xf   :  { %v49_v31 = vld [vmem:[%s1008_s2] sm:$0xff]  ;;  %v184_v33 = vld [vmem:[%s1010_s4 + $0x8] sm:$0xff]  ;;  %v45_v37 = vld [vmem:[%s1007_s1 + $0x30] sm:$0xff] }
  0x10   :  { %v187_v38 = vld [vmem:[%s1010_s4 + $0x20] sm:$0xff]  ;;  %v312_v39 = vld [vmem:[%s1012_s6 + $0x38] sm:$0xff]  ;;  %v189_v40 = vld [vmem:[%s1010_s4 + $0x30] sm:$0xff]  ;;  %s586_s6 = sshll.u32 %s703_s15, 4  ;;  %s587_s6 = int_to_ptr.vmem [resolvable:$true] %s586_s6 }
  0x11   :  { %v188_v41 = vld [vmem:[%s1010_s4 + $0x28] sm:$0xff]  ;;  %v46_v42 = vld [vmem:[%s1007_s1 + $0x38] sm:$0xff]  ;;  %v448_v45 = vld [vmem:[%s1015_s9] sm:$0xff] }
  0x12   :  { %v190_v43 = vld [vmem:[%s1010_s4 + $0x38] sm:$0xff]  ;;  %v449_v44 = vld [vmem:[%s1015_s9 + $0x8] sm:$0xff]  ;;  %v450_v46 = vld [vmem:[%s1015_s9 + $0x10] sm:$0xff] }
  0x13   :  { %625 = vmatmul.msk.f32.gmra.mxu2 %vm362_vm2, %v307_v14  ;;  %84 = vperm.xlu1 %645, %v54_v15   ;;  %v452_v47 = vld [vmem:[%s1015_s9 + $0x20] sm:$0xff]  ;;  %v451_v48 = vld [vmem:[%s1015_s9 + $0x18] sm:$0xff]  ;;  %v453_v49 = vld [vmem:[%s1015_s9 + $0x28] sm:$0xff] }
  0x14   :  { %339 = vperm.xlu0 %644, %v317_v16   ;;  %v455_v50 = vld [vmem:[%s1015_s9 + $0x38] sm:$0xff]  ;;  %v454_v51 = vld [vmem:[%s1015_s9 + $0x30] sm:$0xff] }
  0x15   :  { %608 = vmatmul.msk.f32.gmra.mxu0 %vm97_vm3, %v41_v17 }
  0x16   :  { %334 = vperm.xlu2 %646, %v316_v18  }
  0x1b   :  { %626 = vmatmul.msk.f32.gmra.mxu2 %vm362_vm2, %v308_v19  ;;  %329 = vperm.xlu1 %645, %v315_v20  }
  0x1c   :  { %79 = vperm.xlu0 %644, %v53_v21  }
  0x1d   :  { %609 = vmatmul.msk.f32.gmra.mxu0 %vm97_vm3, %v42_v22 }
  0x1e   :  { %74 = vperm.xlu2 %646, %v52_v23  }
  0x23   :  { %627 = vmatmul.msk.f32.gmra.mxu2 %vm362_vm2, %v309_v24  ;;  %69 = vperm.xlu1 %645, %v51_v25  }
  0x24   :  { %324 = vperm.xlu0 %644, %v314_v26  }
  0x25   :  { %610 = vmatmul.msk.f32.gmra.mxu0 %vm97_vm3, %v43_v27 }
  0x26   :  { %64 = vperm.xlu2 %646, %v50_v28  }
  0x2b   :  { %628 = vmatmul.msk.f32.gmra.mxu2 %vm362_vm2, %v310_v29  ;;  %193 = vperm.xlu1 %645, %v183_v30  }
  0x2c   :  { %59 = vperm.xlu0 %644, %v49_v31  }
  0x2d   :  { %611 = vmatmul.msk.f32.gmra.mxu0 %vm97_vm3, %v44_v32 }
  0x2e   :  { %198 = vperm.xlu2 %646, %v184_v33  }
  0x33   :  { %629 = vmatmul.msk.f32.gmra.mxu2 %vm362_vm2, %v311_v34  ;;  %208 = vperm.xlu1 %645, %v186_v35  }
  0x34   :  { %203 = vperm.xlu0 %644, %v185_v36  }
  0x35   :  { %612 = vmatmul.msk.f32.gmra.mxu0 %vm97_vm3, %v45_v37 }
  0x36   :  { %213 = vperm.xlu2 %646, %v187_v38  }
  0x3b   :  { %630 = vmatmul.msk.f32.gmra.mxu2 %vm362_vm2, %v312_v39  ;;  %223 = vperm.xlu1 %645, %v189_v40  }
  0x3c   :  { %218 = vperm.xlu0 %644, %v188_v41  }
  0x3d   :  { %613 = vmatmul.msk.f32.gmra.mxu0 %vm97_vm3, %v46_v42 }
  0x3e   :  { %228 = vperm.xlu2 %646, %v190_v43  }
  0x43   :  { %463 = vperm.xlu1 %645, %v449_v44  }
  0x44   :  { %458 = vperm.xlu0 %644, %v448_v45  }
  0x46   :  { %468 = vperm.xlu2 %646, %v450_v46  }
  0x4b   :  { %478 = vperm.xlu1 %645, %v452_v47  }
  0x4c   :  { %473 = vperm.xlu0 %644, %v451_v48  }
  0x4e   :  { %483 = vperm.xlu2 %646, %v453_v49  }
  0x53   :  { %493 = vperm.xlu1 %645, %v455_v50   ;;  %v175_v50 = vld [vmem:[%s1009_s3] sm:$0xff] }
  0x54   :  { %488 = vperm.xlu0 %644, %v454_v51  }
  0x60   :  { %v345_v61 = vpop.permute.xlu2 %344 }
  0x68   :  { %v90_v2 = vpop.permute.xlu2 %89 }
  0x70   :  { %v335_v8 = vpop.permute.xlu2 %334 }
  0x75   :  { %v350_v59 = vpop.permute.xlu1 %349 }
  0x76   :  { %v360_v56 = vpop.permute.xlu0 %359 }
  0x78   :  { %v75_v13 = vpop.permute.xlu2 %74 }
  0x7d   :  { %v95_v1 = vpop.permute.xlu1 %94 }
  0x7e   :  { %v355_v62 = vpop.permute.xlu0 %354 }
  0x80   :  { %v65_v34 = vpop.permute.xlu2 %64 }
  0x82   :  { %v143_v52 = vpop.f32.mrf.mxu0 }
  0x85   :  { %v85_v6 = vpop.permute.xlu1 %84 }
  0x86   :  { %v933_v53 = vpop.f32.mrf.mxu2  ;;  %v340_v3 = vpop.permute.xlu0 %339 }
  0x8a   :  { %v146_v54 = vpop.f32.mrf.mxu0 }
  0x8b   :  { %v147_v36 = vadd.f32 %v146_v54, %v65_v34  ;;  %v176_v54 = vld [vmem:[%s1009_s3 + $0x8] sm:$0xff] }
  0x8d   :  { %v330_v12 = vpop.permute.xlu1 %329  ;;  %v168_v44 = vmax.f32 %v147_v36, 0.0 }
  0x8e   :  { %v411_v55 = vpop.f32.mrf.mxu2  ;;  %v80_v9 = vpop.permute.xlu0 %79 }
  0x8f   :  { %v412_v45 = vadd.f32 %v411_v55, %v330_v12  ;;  %v441_v55 = vld [vmem:[%s1014_s8 + $0x8] sm:$0xff] }
  0x91   :  { %v433_v51 = vmax.f32 %v412_v45, 0.0 }
  0x92   :  { %v149_v57 = vpop.f32.mrf.mxu0 }
  0x95   :  { %v70_v29 = vpop.permute.xlu1 %69 }
  0x96   :  { %v414_v58 = vpop.f32.mrf.mxu2  ;;  %v325_v14 = vpop.permute.xlu0 %324  ;;  %v150_v30 = vadd.f32 %v149_v57, %v70_v29  ;;  %v442_v57 = vld [vmem:[%s1014_s8 + $0x10] sm:$0xff] }
  0x97   :  { %v415_v41 = vadd.f32 %v414_v58, %v335_v8  ;;  %v409_v47 = vadd.f32 %v933_v53, %v325_v14  ;;  %v440_v53 = vld [vmem:[%s1014_s8] sm:$0xff]  ;;  %v178_v58 = vld [vmem:[%s1009_s3 + $0x18] sm:$0xff] }
  0x98   :  { %v169_v40 = vmax.f32 %v150_v30, 0.0 }
  0x99   :  { %v434_v48 = vmax.f32 %v415_v41, 0.0 }
  0x9a   :  { %v152_v60 = vpop.f32.mrf.mxu0 }
  0x9b   :  { %v153_v25 = vadd.f32 %v152_v60, %v75_v13  ;;  %v179_v60 = vld [vmem:[%s1009_s3 + $0x20] sm:$0xff] }
  0x9d   :  { %v170_v37 = vmax.f32 %v153_v25, 0.0 }
  0x9e   :  { %v417_v63 = vpop.f32.mrf.mxu2  ;;  %v60_v35 = vpop.permute.xlu0 %59 }
  0x9f   :  { %v418_v38 = vadd.f32 %v417_v63, %v340_v3  ;;  %v144_v42 = vadd.f32 %v143_v52, %v60_v35  ;;  %v432_v52 = vmax.f32 %v409_v47, 0.0  ;;  %v445_v63 = vld [vmem:[%s1014_s8 + $0x28] sm:$0xff]  ;;  %v447_v3 = vld [vmem:[%s1014_s8 + $0x38] sm:$0xff] }
  0xa1   :  { %v435_v46 = vmax.f32 %v418_v38, 0.0  ;;  %v167_v49 = vmax.f32 %v144_v42, 0.0 }
  0xa2   :  { %v155_v0 = vpop.f32.mrf.mxu0 }
  0xa3   :  { %v156_v21 = vadd.f32 %v155_v0, %v80_v9  ;;  %v181_v0 = vld [vmem:[%s1009_s3 + $0x30] sm:$0xff] }
  0xa5   :  { %v171_v31 = vmax.f32 %v156_v21, 0.0 }
  0xa6   :  { %v420_v4 = vpop.f32.mrf.mxu2 }
  0xa7   :  { %v421_v32 = vadd.f32 %v420_v4, %v345_v61  ;;  %v444_v61 = vld [vmem:[%s1014_s8 + $0x20] sm:$0xff]  ;;  %v194_v4 = vpop.permute.xlu1 %193 }
  0xa9   :  { %v436_v43 = vmax.f32 %v421_v32, 0.0 }
  0xaa   :  { %v158_v5 = vpop.f32.mrf.mxu0 }
  0xab   :  { %v159_v18 = vadd.f32 %v158_v5, %v85_v6  ;;  %v204_v5 = vpop.permute.xlu0 %203  ;;  %v199_v6 = vpop.permute.xlu2 %198 }
  0xad   :  { %v172_v26 = vmax.f32 %v159_v18, 0.0 }
  0xae   :  { %v423_v7 = vpop.f32.mrf.mxu2 }
  0xaf   :  { %v424_v27 = vadd.f32 %v423_v7, %v350_v59  ;;  %v443_v59 = vld [vmem:[%s1014_s8 + $0x18] sm:$0xff]  ;;  %v209_v7 = vpop.permute.xlu1 %208 }
  0xb1   :  { %v437_v39 = vmax.f32 %v424_v27, 0.0 }
  0xb2   :  { %v161_v10 = vpop.f32.mrf.mxu0 }
  0xb3   :  { %v162_v16 = vadd.f32 %v161_v10, %v90_v2  ;;  %v182_v2 = vld [vmem:[%s1009_s3 + $0x38] sm:$0xff]  ;;  %v219_v8 = vpop.permute.xlu0 %218 }
  0xb5   :  { %v173_v22 = vmax.f32 %v162_v16, 0.0 }
  0xb6   :  { %v426_v11 = vpop.f32.mrf.mxu2 }
  0xb7   :  { %v427_v23 = vadd.f32 %v426_v11, %v355_v62  ;;  %v180_v62 = vld [vmem:[%s1009_s3 + $0x28] sm:$0xff]  ;;  %v214_v11 = vpop.permute.xlu2 %213  ;;  %v224_v12 = vpop.permute.xlu1 %223 }
  0xb9   :  { %v438_v33 = vmax.f32 %v427_v23, 0.0 }
  0xba   :  { %v164_v15 = vpop.f32.mrf.mxu0 }
  0xbb   :  { %v165_v17 = vadd.f32 %v164_v15, %v95_v1  ;;  %v446_v1 = vld [vmem:[%s1014_s8 + $0x30] sm:$0xff]  ;;  %v459_v15 = vpop.permute.xlu0 %458 }
  0xbd   :  { %v174_v19 = vmax.f32 %v165_v17, 0.0 }
  0xbe   :  { %v429_v20 = vpop.f32.mrf.mxu2 }
  0xbf   :  { %264 = vmatpush.msra.mxu1 %v174_v19  ;;  %v430_v24 = vadd.f32 %v429_v20, %v360_v56  ;;  %v177_v56 = vld [vmem:[%s1009_s3 + $0x10] sm:$0xff]  ;;  %v229_v18 = vpop.permute.xlu2 %228  ;;  %v464_v21 = vpop.permute.xlu1 %463  ;;  %s700_s3 = smov [#allocation2]  }
  0xc0   :  { %s573_s8 = sshll.u32 %s700_s3, 4  ;;  %s574_s8 = int_to_ptr.vmem [resolvable:$true] %s573_s8 }
  0xc1   :  { %265 = vmatpush.msra.mxu1 %v173_v22  ;;  %v439_v28 = vmax.f32 %v430_v24, 0.0 }
  0xc3   :  { %266 = vmatpush.msra.mxu1 %v172_v26  ;;  %528 = vmatpush.msra.mxu3 %v439_v28 }
  0xc5   :  { %529 = vmatpush.msra.mxu3 %v438_v33  ;;  %267 = vmatpush.msra.mxu1 %v171_v31  ;;  %v474_v31 = vpop.permute.xlu0 %473 }
  0xc7   :  { %268 = vmatpush.msra.mxu1 %v170_v37  ;;  %530 = vmatpush.msra.mxu3 %v437_v39  ;;  %v469_v26 = vpop.permute.xlu2 %468  ;;  %v479_v36 = vpop.permute.xlu1 %478 }
  0xc9   :  { %269 = vmatpush.msra.mxu1 %v169_v40  ;;  %531 = vmatpush.msra.mxu3 %v436_v43 }
  0xcb   :  { %270 = vmatpush.msra.mxu1 %v168_v44  ;;  %532 = vmatpush.msra.mxu3 %v435_v46 }
  0xcd   :  { %271 = vmatpush.msra.mxu1 %v167_v49  ;;  %533 = vmatpush.msra.mxu3 %v434_v48  ;;  %v489_v46 = vpop.permute.xlu0 %488 }
  0xce   :  { %614 = vmatmul.msk.f32.vlgmr.msra.gmra.mxu1 %vm231_vm4, %v175_v50 }
  0xcf   :  { %534 = vmatpush.msra.mxu3 %v433_v51  ;;  %v484_v41 = vpop.permute.xlu2 %483  ;;  %v494_v49 = vpop.permute.xlu1 %493 }
  0xd1   :  { %535 = vmatpush.msra.mxu3 %v432_v52 }
  0xd2   :  { %631 = vmatmul.msk.f32.vlgmr.msra.gmra.mxu3 %vm231_vm4, %v440_v53 }
  0xd6   :  { %615 = vmatmul.msk.f32.gmra.mxu1 %vm231_vm4, %v176_v54 }
  0xda   :  { %632 = vmatmul.msk.f32.gmra.mxu3 %vm231_vm4, %v441_v55 }
  0xde   :  { %616 = vmatmul.msk.f32.gmra.mxu1 %vm231_vm4, %v177_v56 }
  0xe2   :  { %633 = vmatmul.msk.f32.gmra.mxu3 %vm231_vm4, %v442_v57 }
  0xe6   :  { %617 = vmatmul.msk.f32.gmra.mxu1 %vm231_vm4, %v178_v58 }
  0xea   :  { %634 = vmatmul.msk.f32.gmra.mxu3 %vm231_vm4, %v443_v59 }
  0xee   :  { %618 = vmatmul.msk.f32.gmra.mxu1 %vm231_vm4, %v179_v60 }
  0xf2   :  { %635 = vmatmul.msk.f32.gmra.mxu3 %vm231_vm4, %v444_v61 }
  0xf6   :  { %619 = vmatmul.msk.f32.gmra.mxu1 %vm231_vm4, %v180_v62 }
  0xfa   :  { %636 = vmatmul.msk.f32.gmra.mxu3 %vm231_vm4, %v445_v63 }
  0xfe   :  { %620 = vmatmul.msk.f32.gmra.mxu1 %vm231_vm4, %v181_v0 }
 0x102   :  { %637 = vmatmul.msk.f32.gmra.mxu3 %vm231_vm4, %v446_v1 }
 0x106   :  { %621 = vmatmul.msk.f32.gmra.mxu1 %vm231_vm4, %v182_v2 }
 0x10a   :  { %638 = vmatmul.msk.f32.gmra.mxu3 %vm231_vm4, %v447_v3 }
 0x14b   :  { %v273_v9 = vpop.f32.mrf.mxu1 }
 0x14c   :  { %v274_v10 = vadd.f32 %v273_v9, %v194_v4 }
 0x14e   :  { %297 = vst [vmem:[#allocation2] sm:$0xff] %v274_v10 }
 0x153   :  { %v276_v13 = vpop.f32.mrf.mxu1 }
 0x154   :  { %v277_v14 = vadd.f32 %v276_v13, %v199_v6 }
 0x155   :  { %v537_v16 = vpop.f32.mrf.mxu3 }
 0x156   :  { %298 = vst [vmem:[#allocation2 + $0x8] sm:$0xff] %v277_v14  ;;  %v538_v17 = vadd.f32 %v537_v16, %v459_v15 }
 0x158   :  { %561 = vst [vmem:[#allocation4] sm:$0xff] %v538_v17 }
 0x15b   :  { %v279_v19 = vpop.f32.mrf.mxu1 }
 0x15c   :  { %v280_v20 = vadd.f32 %v279_v19, %v204_v5 }
 0x15d   :  { %v540_v22 = vpop.f32.mrf.mxu3 }
 0x15e   :  { %299 = vst [vmem:[#allocation2 + $0x10] sm:$0xff] %v280_v20  ;;  %v541_v23 = vadd.f32 %v540_v22, %v464_v21 }
 0x160   :  { %562 = vst [vmem:[#allocation4 + $0x8] sm:$0xff] %v541_v23 }
 0x163   :  { %v282_v24 = vpop.f32.mrf.mxu1 }
 0x164   :  { %v283_v25 = vadd.f32 %v282_v24, %v209_v7 }
 0x165   :  { %v543_v27 = vpop.f32.mrf.mxu3 }
 0x166   :  { %300 = vst [vmem:[#allocation2 + $0x18] sm:$0xff] %v283_v25  ;;  %v544_v28 = vadd.f32 %v543_v27, %v469_v26 }
 0x168   :  { %563 = vst [vmem:[#allocation4 + $0x10] sm:$0xff] %v544_v28 }
 0x16b   :  { %v285_v29 = vpop.f32.mrf.mxu1 }
 0x16c   :  { %v286_v30 = vadd.f32 %v285_v29, %v214_v11 }
 0x16d   :  { %v546_v32 = vpop.f32.mrf.mxu3 }
 0x16e   :  { %301 = vst [vmem:[#allocation2 + $0x20] sm:$0xff] %v286_v30  ;;  %v547_v33 = vadd.f32 %v546_v32, %v474_v31 }
 0x170   :  { %564 = vst [vmem:[#allocation4 + $0x18] sm:$0xff] %v547_v33 }
 0x173   :  { %v288_v34 = vpop.f32.mrf.mxu1 }
 0x174   :  { %v289_v35 = vadd.f32 %v288_v34, %v219_v8 }
 0x175   :  { %v549_v37 = vpop.f32.mrf.mxu3 }
 0x176   :  { %302 = vst [vmem:[#allocation2 + $0x28] sm:$0xff] %v289_v35  ;;  %v550_v38 = vadd.f32 %v549_v37, %v479_v36 }
 0x178   :  { %565 = vst [vmem:[#allocation4 + $0x20] sm:$0xff] %v550_v38 }
 0x17b   :  { %v291_v39 = vpop.f32.mrf.mxu1 }
 0x17c   :  { %v292_v40 = vadd.f32 %v291_v39, %v224_v12 }
 0x17d   :  { %v552_v42 = vpop.f32.mrf.mxu3 }
 0x17e   :  { %303 = vst [vmem:[#allocation2 + $0x30] sm:$0xff] %v292_v40  ;;  %v553_v43 = vadd.f32 %v552_v42, %v484_v41 }
 0x180   :  { %566 = vst [vmem:[#allocation4 + $0x28] sm:$0xff] %v553_v43 }
 0x183   :  { %v294_v44 = vpop.f32.mrf.mxu1 }
 0x184   :  { %v295_v45 = vadd.f32 %v294_v44, %v229_v18 }
 0x185   :  { %v555_v47 = vpop.f32.mrf.mxu3 }
 0x186   :  { %304 = vst [vmem:[#allocation2 + $0x38] sm:$0xff] %v295_v45  ;;  %v556_v48 = vadd.f32 %v555_v47, %v489_v46 }
 0x187   :  { %581 = dma.vmem_to_hbm [thread:$0]  %s574_s8, 1024, %s576_s13, [#allocation3], %s701_s0, %s701_s0, %s702_s14  }
 0x188   :  { %567 = vst [vmem:[#allocation4 + $0x30] sm:$0xff] %v556_v48 }
 0x18d   :  { %v558_v50 = vpop.f32.mrf.mxu3 }
 0x18e   :  { %v559_v51 = vadd.f32 %v558_v50, %v494_v49 }
 0x190   :  { %568 = vst [vmem:[#allocation4 + $0x38] sm:$0xff] %v559_v51 }
 0x191   :  { %594 = dma.vmem_to_hbm [thread:$0]  %s587_s6, 1024, %s589_s18, [#allocation5], %s701_s0, %s701_s0, %s702_s14  }
 0x192   :  { %695 = dma.done.wait [#allocation3], 1024  }
 0x193   :  { %696 = vsyncadd [#allocation3], 4294966272 }
 0x194   :  { %697 = dma.done.wait [#allocation5], 1024  }
 0x195   :  { %698 = vsyncadd [#allocation5], 4294966272 }
 0x196   :  { %603 = vsyncpa [#allocation3], 1 }
 0x197   :  { %604 = vsyncpa [#allocation5], 1 }

</bundles_post_ra>
